<compile_context>
chip_gen: v7x
topology: tpu7x:2x2x1
jax: 0.10.0
libtpu: 0.0.40
codegen_flags: <defaults>
</compile_context>

<pallas_src>
import jax
import jax.numpy as jnp
from jax import lax
from jax.experimental import pallas as pl
from jax.experimental.pallas import tpu as pltpu

_EPS = 1e-8  # matches nn.InstanceNorm2d(..., eps=1e-08) in the module spec


def adain_kernel(gamma_ref, beta_ref, x_ref, o_ref):
    # gamma_ref, beta_ref : (1, Ct, 1)   per-channel affine from the style MLP
    # x_ref, o_ref        : (1, Ct, HW)  lane-dense image block
    x = x_ref[...].astype(jnp.float32)

    # Two-pass mean/var (numerically stable), reusing xm for var and normalize.
    mean = jnp.mean(x, axis=-1, keepdims=True)          # (1, Ct, 1)
    xm = x - mean
    var = jnp.mean(xm * xm, axis=-1, keepdims=True)     # biased var, (1, Ct, 1)

    scale = gamma_ref[...].astype(jnp.float32) * lax.rsqrt(var + _EPS)
    beta = beta_ref[...].astype(jnp.float32)

    # Single fused FMA pass: gamma * (x - mean) / sqrt(var + eps) + beta
    o_ref[...] = (xm * scale + beta).astype(o_ref.dtype)


def _pick_channel_tile(C, HW, itemsize, budget_bytes=4 << 20):
    """Largest channel tile dividing C whose block fits the VMEM budget."""
    if C * HW * itemsize <= budget_bytes:
        return C
    best = 1
    for ct in range(C, 0, -1):
        if C % ct == 0 and ct * HW * itemsize <= budget_bytes:
            if ct % 8 == 0:
                return ct
            best = max(best, ct)
    return best


def adain_forward(x, s, weight, bias):
    """
    x:      (B, C, H, W) float32
    s:      (B, E)       float32
    weight: (2C, E)      nn.Linear weight (PyTorch layout)
    bias:   (2C,)        nn.Linear bias
    """
    B, C, H, W = x.shape
    HW = H * W

    # Style linear hoisted to one batched XLA gemm (uses the MXU properly).
    style = s @ weight.T + bias                    # (B, 2C)
    gamma = style[:, :C].reshape(B, C, 1)          # (B, C, 1)
    beta = style[:, C:].reshape(B, C, 1)           # (B, C, 1)

    # Lane-dense layout: reduction axis (H*W) on the lanes. Free reshape
    # (row-major contiguous).
    x3 = x.reshape(B, C, HW)

    itemsize = jnp.dtype(x.dtype).itemsize
    Ct = _pick_channel_tile(C, HW, itemsize)
    grid = (B, C // Ct)

    # VMEM budget: in-block + out-block, each double-buffered, plus headroom.
    block_bytes = Ct * HW * itemsize
    vmem_needed = 4 * block_bytes + (1 << 20)
    vmem_limit = int(min(max(vmem_needed, 16 << 20), 64 << 20))

    out3 = pl.pallas_call(
        adain_kernel,
        out_shape=jax.ShapeDtypeStruct((B, C, HW), x.dtype),
        grid_spec=pltpu.PrefetchScalarGridSpec(
            num_scalar_prefetch=0,
            grid=grid,
            in_specs=[
                pl.BlockSpec((1, Ct, 1), lambda b, c: (b, c, 0)),   # gamma
                pl.BlockSpec((1, Ct, 1), lambda b, c: (b, c, 0)),   # beta
                pl.BlockSpec((1, Ct, HW), lambda b, c: (b, c, 0)),  # x
            ],
            out_specs=pl.BlockSpec((1, Ct, HW), lambda b, c: (b, c, 0)),
        ),
        compiler_params=pltpu.CompilerParams(
            dimension_semantics=("parallel", "parallel"),
            vmem_limit_bytes=vmem_limit,
        ),
    )(gamma, beta, x3)

    return out3.reshape(B, C, H, W)


def adain_reference(x, s, weight, bias):
    """Plain-JAX reference matching the PyTorch module semantics."""
    B, C, H, W = x.shape
    style = s @ weight.T + bias                  # (B, 2C)
    gamma = style[:, :C].reshape(B, C, 1, 1)
    beta = style[:, C:].reshape(B, C, 1, 1)
    mean = jnp.mean(x, axis=(2, 3), keepdims=True)
    var = jnp.mean((x - mean) ** 2, axis=(2, 3), keepdims=True)
    normed = (x - mean) / jnp.sqrt(var + _EPS)
    return gamma * normed + beta


if __name__ == "__main__":
    B, C, H, W = 2, 4, 16, 16
    E = 32  # embedding_dim

    key = jax.random.PRNGKey(0)
    kx, ks, kw, kb = jax.random.split(key, 4)

    x = jax.random.normal(kx, (B, C, H, W), dtype=jnp.float32)
    s = jax.random.normal(ks, (B, E), dtype=jnp.float32)

    # Deterministic parameter init mimicking nn.Linear(E, 2C) defaults
    # (uniform in [-1/sqrt(E), 1/sqrt(E)]).
    bound = 1.0 / (E ** 0.5)
    weight = jax.random.uniform(kw, (2 * C, E), minval=-bound, maxval=bound,
                                dtype=jnp.float32)
    bias = jax.random.uniform(kb, (2 * C,), minval=-bound, maxval=bound,
                              dtype=jnp.float32)

    out = adain_forward(x, s, weight, bias)
    out = jax.block_until_ready(out)

    ref = adain_reference(x, s, weight, bias)
    assert out.shape == (B, C, H, W)
    assert jnp.allclose(out, ref, atol=1e-4, rtol=1e-4), (
        float(jnp.max(jnp.abs(out - ref)))
    )

    print("KERNEL_OK")
</pallas_src>

<mosaic_0001>
module attributes {stable_mosaic.version = 11 : i64} {
  func.func @adain_kernel(%arg0: i32, %arg1: i32, %arg2: memref<1x4x1xf32, #tpu.memory_space<vmem>>, %arg3: memref<1x4x1xf32, #tpu.memory_space<vmem>>, %arg4: memref<1x4x256xf32, #tpu.memory_space<vmem>>, %arg5: memref<1x4x256xf32, #tpu.memory_space<vmem>>) attributes {dimension_semantics = [#tpu.dimension_semantics<parallel>, #tpu.dimension_semantics<parallel>], iteration_bounds = array<i64: 2, 1>, scalar_prefetch = 0 : i64, scratch_operands = 0 : i64, tpu.core_type = #tpu.core_type<tc>, window_params = [{transform_indices = @transform_0, window_bounds = array<i64: 1, 4, 1>}, {transform_indices = @transform_1, window_bounds = array<i64: 1, 4, 1>}, {transform_indices = @transform_2, window_bounds = array<i64: 1, 4, 256>}, {transform_indices = @transform_3, window_bounds = array<i64: 1, 4, 256>}]} {
    %c0 = arith.constant 0 : index
    %c0_0 = arith.constant 0 : index
    %c0_1 = arith.constant 0 : index
    %0 = vector.load %arg4[%c0, %c0_0, %c0_1] : memref<1x4x256xf32, #tpu.memory_space<vmem>>, vector<1x4x256xf32>
    %cst = arith.constant dense<0.000000e+00> : vector<1x4xf32>
    %1 = vector.multi_reduction <add>, %0, %cst [2] : vector<1x4x256xf32> to vector<1x4xf32>
    %2 = vector.shape_cast %1 : vector<1x4xf32> to vector<1x4x1xf32>
    %cst_2 = arith.constant 2.560000e+02 : f32
    %3 = vector.broadcast %cst_2 : f32 to vector<1x4x1xf32>
    %4 = arith.divf %2, %3 : vector<1x4x1xf32>
    %5 = vector.broadcast %4 : vector<1x4x1xf32> to vector<1x4x256xf32>
    %6 = arith.subf %0, %5 : vector<1x4x256xf32>
    %7 = arith.mulf %6, %6 : vector<1x4x256xf32>
    %cst_3 = arith.constant dense<0.000000e+00> : vector<1x4xf32>
    %8 = vector.multi_reduction <add>, %7, %cst_3 [2] : vector<1x4x256xf32> to vector<1x4xf32>
    %9 = vector.shape_cast %8 : vector<1x4xf32> to vector<1x4x1xf32>
    %cst_4 = arith.constant 2.560000e+02 : f32
    %10 = vector.broadcast %cst_4 : f32 to vector<1x4x1xf32>
    %11 = arith.divf %9, %10 : vector<1x4x1xf32>
    %c0_5 = arith.constant 0 : index
    %c0_6 = arith.constant 0 : index
    %c0_7 = arith.constant 0 : index
    %12 = vector.load %arg2[%c0_5, %c0_6, %c0_7] : memref<1x4x1xf32, #tpu.memory_space<vmem>>, vector<1x4x1xf32>
    %cst_8 = arith.constant 9.99999993E-9 : f32
    %13 = vector.broadcast %cst_8 : f32 to vector<1x4x1xf32>
    %14 = arith.addf %11, %13 : vector<1x4x1xf32>
    %15 = math.rsqrt %14 : vector<1x4x1xf32>
    %16 = arith.mulf %12, %15 : vector<1x4x1xf32>
    %c0_9 = arith.constant 0 : index
    %c0_10 = arith.constant 0 : index
    %c0_11 = arith.constant 0 : index
    %17 = vector.load %arg3[%c0_9, %c0_10, %c0_11] : memref<1x4x1xf32, #tpu.memory_space<vmem>>, vector<1x4x1xf32>
    %18 = vector.broadcast %16 : vector<1x4x1xf32> to vector<1x4x256xf32>
    %19 = arith.mulf %6, %18 : vector<1x4x256xf32>
    %20 = vector.broadcast %17 : vector<1x4x1xf32> to vector<1x4x256xf32>
    %21 = arith.addf %19, %20 : vector<1x4x256xf32>
    %c0_12 = arith.constant 0 : index
    %c0_13 = arith.constant 0 : index
    %c0_14 = arith.constant 0 : index
    %22 = vector.load %arg5[%c0_12, %c0_13, %c0_14] : memref<1x4x256xf32, #tpu.memory_space<vmem>>, vector<1x4x256xf32>
    tpu.vector_store %arg5[%c0_12, %c0_13, %c0_14], %21 {strides = array<i32>} : memref<1x4x256xf32, #tpu.memory_space<vmem>>, vector<1x4x256xf32>,
    return
  }
  func.func @transform_0(%arg0: i32, %arg1: i32) -> (i32, i32, i32) {
    %c0_i32 = arith.constant 0 : i32
    %c0_i32_0 = arith.constant 0 : i32
    return %arg0, %arg1, %c0_i32 : i32, i32, i32
  }
  func.func @transform_1(%arg0: i32, %arg1: i32) -> (i32, i32, i32) {
    %c0_i32 = arith.constant 0 : i32
    %c0_i32_0 = arith.constant 0 : i32
    return %arg0, %arg1, %c0_i32 : i32, i32, i32
  }
  func.func @transform_2(%arg0: i32, %arg1: i32) -> (i32, i32, i32) {
    %c0_i32 = arith.constant 0 : i32
    %c0_i32_0 = arith.constant 0 : i32
    return %arg0, %arg1, %c0_i32 : i32, i32, i32
  }
  func.func @transform_3(%arg0: i32, %arg1: i32) -> (i32, i32, i32) {
    %c0_i32 = arith.constant 0 : i32
    %c0_i32_0 = arith.constant 0 : i32
    return %arg0, %arg1, %c0_i32 : i32, i32, i32
  }
}

</mosaic_0001>

<bundles_post_ra>
// kernel: tpu_custom_call.1
= control target key start
LH: loop header
LB: loop body
LE: loop exit
PB: predicated region body
PF: predicated region fallthrough
CT: control target
= control target key end

     0   :  { %8 = vsyncpa [#allocation3], 0  ;;  %s751_s0 = inlined_call_operand.vmem [shape: f32[2,4,1], index: 0, kind: input, shape index: {}]   ;;  %s752_s1 = inlined_call_operand.vmem [shape: f32[2,4,1], index: 1, kind: input, shape index: {}]   ;;  %s753_s2 = inlined_call_operand.vmem [shape: f32[2,4,256], index: 2, kind: input, shape index: {}]   ;;  %s754_s3 = inlined_call_operand.hbm [shape: f32[2,4,256], index: 3, kind: output, shape index: {}]  }
   0x1   :  { %10 = vsyncpa [#allocation3 + $0x1], 0  ;;  %s625_s12 = smov 0   ;;  %s627_s13 = smov 0  }
   0x2   :  { %s629_s14 = smov 0   ;;  %s631_s15 = smov 0  }
   0x3   :  { %s633_s16 = smov 0   ;;  %s635_s17 = smov 0  }
   0x4 LB: > { %s443_s18 = sadd.s32 4294967295, %s600_s17   ;;  %s444_s19 = sadd.s32 4294967294, %s600_s17   ;;  %s600_s17 = sphi %s635_s17, %s16_s17   ;;  %s596_s16 = sphi %s633_s16, %s761_s16   ;;  %s592_s15 = sphi %s631_s15, %s760_s15   ;;  %s588_s14 = sphi %s629_s14, %s759_s14   ;;  %s584_s13 = sphi %s627_s13, %s758_s13   ;;  %s580_s12 = sphi %s625_s12, %s757_s12  }
   0x5   : > { %s28_s20 = sadd.s32 1, %s596_s16  ;;  %s121_s21 = sadd.s32 1, %s588_s14 }
   0x6   : > { %p30_p0 = scmp.ge.s32.totalorder %s28_s20, 2  ;;  %p131_p1 = scmp.ne.s32.totalorder %s588_s14, %s584_s13 }
   0x7   : > { %p132_p2 = scmp.eq.s32.totalorder %s443_s18, 1  ;;  %p137_p3 = scmp.ne.s32.totalorder %s584_s13, %s580_s12 }
   0x8   : > { %s763_s20 = smov (%p30_p0, %s28_s20), 0  ;;  %p138_p5 = scmp.eq.s32.totalorder %s444_s19, 1 }
   0x9   : > { %p665_p4 = por %p132_p2, %p131_p1  ;;  %s116_s23 = ssub.s32 %s596_s16, %s763_s20 }
   0xa   : > { %p447_p6 = scmp.ge.s32.totalorder %s600_s17, 1  ;;  %p119_p7 = scmp.eq.s32.totalorder %s116_s23, 0 }
   0xb   : > { %p672_p8 = por %p138_p5, %p137_p3  ;;  %p188_p9 = scmp.lt.s32.totalorder %s600_s17, 3 }
   0xc   : > { %s678_s25 = scalar_select %p119_p7, %s588_s14, %s121_s21  }
   0xd   : > { %p189_p10 = pnand %p447_p6, %p188_p9 }
   0xe   : > { %p230_p11 = scmp.lt.s32.totalorder (!%p189_p10), %s592_s15, 1  ;;  %vm257_vm0 = vcmask (!%p189_p10), 1043456   ;;  %v602_v5 = vmov (!%p189_p10), 839922192   ;;  %v269_v7 = vlaneseq (!%p189_p10)  ;;  %v603_v20 = vmov (!%p189_p10), 0   ;;  %s227_s11 = sand.u32 (!%p189_p10), 1, %s584_s13  }
   0xf   : > { %192 = sbr.rel (%p189_p10) target bundleno = 496 (0x1f0), region = 32  ;;  %v267_v6 = vunpack.c.l.s4 (!%p189_p10), %v602_v5  ;;  %517 = vset.pattern.permute.xlu1 (!%p189_p10), %v603_v20  ;;  %518 = vset.pattern.permute.xlu0 (!%p189_p10), %v603_v20  ;;  %s448_s18 = sshll.u32 (!%p189_p10), %s227_s11, 3 }
  0x10   : > { %v270_v9 = vshrl.u32 (!%p189_p10), %v269_v7, 7  ;;  %s459_s19 = sshll.u32 (!%p189_p10), %s592_s15, 7  ;;  %s229_s21 = scalar_lea.vmem (!%p189_p10), [#allocation2], %s448_s18 }
  0x11   : > { %v268_v8 = vunpack.c.0.s8 (!%p189_p10), %v267_v6  ;;  %s334_s23 = sshll.u32 (!%p189_p10), %s229_s21, 4  ;;  %s704_s28 = scalar_lea.hbm (!%p189_p10), %s754_s3, %s459_s19  ;;  %s706_s23 = int_to_ptr.vmem [resolvable:$true] %s334_s23 }
  0x12   : > { %s318_s29 = scalar_lea.sflag (!%p189_p10), [#allocation3], %s227_s11 }
  0x13   : > { %v271_v10 = vsub.s32 (!%p189_p10), %v268_v8, %v270_v9 }
  0x16   : > { %s682_s26 = scalar_select %p230_p11, %s592_s15, 1 }
  0x17   : > { %s604_s15 = smov [#allocation2]  }
  0x18   : > { %s458_s27 = sshll.u32 %s682_s26, 3  ;;  %s449_s4 = sshll.u32 %s682_s26, 2 }
  0x19   : > { %s252_s30 = scalar_lea.vmem %s753_s2, %s458_s27  ;;  %s236_s7 = scalar_lea.vmem %s751_s0, %s449_s4 }
  0x1a   : > { %v253_v0 = vld [vmem:[%s252_s30] sm:$0xff]  ;;  %s243_s10 = scalar_lea.vmem %s752_s1, %s449_s4  ;;  %s522_s30 = scalar_lea.vmem %s706_s23, 128 }
  0x1b   : > { %v255_v1 = vcombine.high %v253_v0, %v253_v0  ;;  %v258_v2 = vsel %vm257_vm0, %v253_v0, 0.0  ;;  %v285_v24 = vld [vmem:[%s236_s7] sm:$0xf]  ;;  %p523_p12 = scmp.ne.s32.totalorder %s706_s23, %s522_s30  ;;  %s526_s4 = sshll.u32 %s604_s15, 4  ;;  %s527_s4 = int_to_ptr.vmem [resolvable:$false] %s526_s4 }
  0x1c   : > { %v289_v27 = vld [vmem:[%s243_s10] sm:$0xf]  ;;  %s528_s5 = scalar_lea.vmem %s527_s4, 256  ;;  %p529_p1 = scmp.lt.s32.totalorder %s706_s23, %s527_s4 }
  0x1d   : > { %v259_v3 = vsel %vm257_vm0, %v255_v1, 0.0  ;;  %p524_p13 = pnand %p523_p12, %p665_p4  ;;  %p530_p2 = scmp.lt.s32.totalorder %s528_s5, %s522_s30 }
  0x1e   : > { %v260_v4 = vadd.f32 %v259_v3, %v258_v2 }
  0x1f   : > { %p525_p0 = pneg %p524_p13  ;;  %p531_p3 = por %p530_p2, %p529_p1 }
  0x20   : > { %261 = vadd.xlane.f32.xlu0 %v260_v4 }
  0x21   : > { %p532_p5 = pnand %p531_p3, %p525_p0 }
  0xad   : > { %v262_v11 = vpop.xlane.xlu0 %261 }
  0xae   : > { %v264_v12 = vmul.f32 0.00390625, %v262_v11 }
  0xb0   : > { %v272_v13 = vrot.slane %v264_v12, %v271_v10 }
  0xb2   : > { %v274_v14 = vsub.f32 %v253_v0, %v272_v13 }
  0xb4   : > { %v275_v15 = vmul.f32 %v274_v14, %v274_v14 }
  0xb6   : > { %v277_v16 = vcombine.high %v275_v15, %v275_v15  ;;  %v279_v17 = vsel %vm257_vm0, %v275_v15, 0.0 }
  0xb8   : > { %v280_v18 = vsel %vm257_vm0, %v277_v16, 0.0 }
  0xb9   : > { %v281_v19 = vadd.f32 %v280_v18, %v279_v17 }
  0xbb   : > { %282 = vadd.xlane.f32.xlu0 %v281_v19 }
 0x148   : > { %v283_v21 = vpop.xlane.xlu0 %282 }
 0x149   : > { %v284_v22 = vmul.f32 0.00390625, %v283_v21 }
 0x14b   : > { %v286_v23 = vadd.f32 1e-08, %v284_v22 }
 0x14d   : > { %520 = vrsqrt.f32 %v286_v23 }
 0x157   : > { %v521_v25 = vpop.eup %520 }
 0x158   : > { %v288_v26 = vmul.f32 %v521_v25, %v285_v24 }
 0x15a   : > { %292 = vperm.xlu1 %517, %v288_v26  }
 0x15e   : > { %305 = vperm.xlu1 %517, %v289_v27  }
 0x1d9   : > { %v293_v28 = vpop.permute.xlu1 %292 }
 0x1da   : > { %v300_v29 = vrot.slane %v293_v28, %v271_v10 }
 0x1dc   : > { %v302_v31 = vmul.f32 %v300_v29, %v274_v14 }
 0x1dd   : > { %v306_v30 = vpop.permute.xlu1 %305 }
 0x1de   : > { %v313_v32 = vrot.slane %v306_v30, %v271_v10 }
 0x1e0   : > { %v315_v33 = vadd.f32 %v313_v32, %v302_v31 }
 0x1e2   : > { %316 = vst [vmem:[%s229_s21] sm:$0xff] %v315_v33 }
 0x1e3   : > { %535 = shalt.err (!%p532_p5)
}
 0x1e4   : > { %s536_s6 = scalar_lea.hbm %s704_s28, 128  ;;  %s540_s9 = scalar_lea.hbm %s754_s3, 256 }
 0x1e5   : > { %p537_p6 = scmp.ne.s32.totalorder %s704_s28, %s536_s6  ;;  %p541_p10 = scmp.lt.u32.totalorder %s704_s28, %s754_s3 }
 0x1e6   : > { %p542_p11 = scmp.lt.u32.totalorder %s540_s9, %s536_s6  ;;  %p544_p13 = scmp.lt.u32.totalorder %s536_s6, %s704_s28 }
 0x1e7   : > { %p538_p7 = pnand %p537_p6, %p665_p4 }
 0x1e8   : > { %p543_p12 = por %p542_p11, %p541_p10 }
 0x1e9   : > { %p539_p9 = pneg %p538_p7 }
 0x1ea   : > { %p545_p0 = por %p544_p13, %p543_p12 }
 0x1ec   : > { %p546_p1 = pnand %p545_p0, %p539_p9 }
 0x1ee   : > { %549 = shalt.err (!%p546_p1)
}
 0x1ef   : > { %460 = dma.vmem_to_hbm [thread:$0]  (%p665_p4), %s706_s23, 128, %s704_s28, %s318_s29  }
 0x1f0 PF: > { %p466_p2 = scmp.ge.s32.totalorder %s600_s17, 2  ;;  %s346_s18 = sand.u32 1, %s580_s12  }
 0x1f1   : > { %s347_s19 = scalar_lea.sflag [#allocation3], %s346_s18 }
 0x1f2   : > { %p463_p3 = pnand %p466_p2, %p672_p8 }
 0x1f4   : > { %575 = dma.done.wait (!%p463_p3), %s347_s19, 128  }
 0x1f5   : > { %577 = vsyncadd (!%p463_p3), %s347_s19, 4294967168  ;;  %s16_s17 = sadd.s32 1, %s600_s17   ;;  %s757_s12 = smov %s584_s13 }
 0x1f6   : > { %p13_p5 = scmp.ge.s32.totalorder %s16_s17, 4   ;;  %s758_s13 = smov %s588_s14 }
 0x1f7   : > { %s759_s14 = smov %s678_s25  ;;  %s760_s15 = smov %s596_s16 }
 0x1f8   : > { %s761_s16 = smov %s763_s20  ;;  %15 = sbr.rel (!%p13_p5) target bundleno = 4 (0x4), region = 73 }
 0x1ff   :  { %352 = vsyncpa [#allocation3], 1 }
 0x200   :  { %354 = vsyncpa [#allocation3 + $0x1], 1 }

</bundles_post_ra>
